<compile_context>
chip_gen: v6e
topology: v6e:2x2x1
jax: 0.10.0
libtpu: 0.0.40
codegen_flags: <defaults>
</compile_context>

<pallas_src>
import math
from functools import partial

import jax
import jax.numpy as jnp
from jax import lax
from jax.experimental import pallas as pl
from jax.experimental.pallas import tpu as pltpu

LANE = 128      # TPU lane width (last dim)
SUBLANE = 8     # TPU sublane width (second-to-last dim)


def _round_up(n: int, m: int) -> int:
    return ((n + m - 1) // m) * m


# ----------------------------------------------------------------------------
# Fused MLP kernel: one grid step = one batch tile through the whole network.
# Weights (constant index_map) stay resident in VMEM; activations stay in
# vregs/VMEM between layers.  Padded columns are zero in x/W/b, so they remain
# exactly zero through matmul + bias + ReLU and never pollute real outputs.
# ----------------------------------------------------------------------------
def _make_fused_mlp_kernel(n_hidden: int, precision):
    def kernel(x_ref, w_in_ref, b_in_ref, w_h_ref, b_h_ref,
               w_out_ref, b_out_ref, o_ref):
        compute_dtype = w_in_ref.dtype          # bf16 (or f32 if requested)

        # Layer 0: (tile_b, in_p) @ (in_p, s_p)
        h = jnp.dot(x_ref[...].astype(compute_dtype), w_in_ref[...],
                    preferred_element_type=jnp.float32,
                    precision=precision) + b_in_ref[...]
        h = jnp.maximum(h, 0.0)

        # Hidden layers: stacked weights, statically unrolled fori_loop.
        def body(layer, h):
            w = w_h_ref[layer]                  # (s_p, s_p)
            b = b_h_ref[layer]                  # (1, s_p)
            h = jnp.dot(h.astype(compute_dtype), w,
                        preferred_element_type=jnp.float32,
                        precision=precision) + b
            return jnp.maximum(h, 0.0)

        if n_hidden > 0:
            h = lax.fori_loop(0, n_hidden, body, h, unroll=True)

        # Output layer (no activation).
        out = jnp.dot(h.astype(compute_dtype), w_out_ref[...],
                      preferred_element_type=jnp.float32,
                      precision=precision) + b_out_ref[...]
        o_ref[...] = out.astype(o_ref.dtype)

    return kernel


# ----------------------------------------------------------------------------
# Parameter preparation (done once, outside the kernel): transpose to
# (in_f, out_f), zero-pad to lane width, cast weights to bf16, and stack the
# n_hidden identical hidden layers into single arrays.
# ----------------------------------------------------------------------------
def prepare_kernel_params(params, weight_dtype=jnp.bfloat16):
    """params: list of (W (out_f, in_f), b (out_f,)) in PyTorch Linear layout."""
    assert len(params) >= 2
    n_hidden = len(params) - 2

    w0, b0 = params[0]
    wl, bl = params[-1]
    s_hidden, in_size = w0.shape
    out_size = wl.shape[0]

    in_p = _round_up(in_size, LANE)
    s_p = _round_up(s_hidden, LANE)
    out_p = _round_up(out_size, LANE)

    w_in = jnp.zeros((in_p, s_p), weight_dtype).at[:in_size, :s_hidden].set(
        w0.T.astype(weight_dtype))
    b_in = jnp.zeros((1, s_p), jnp.float32).at[0, :s_hidden].set(
        b0.astype(jnp.float32))

    n_h_alloc = max(n_hidden, 1)                 # keep a non-empty operand
    w_h = jnp.zeros((n_h_alloc, s_p, s_p), weight_dtype)
    b_h = jnp.zeros((n_h_alloc, 1, s_p), jnp.float32)
    for l in range(n_hidden):
        w, b = params[1 + l]
        w_h = w_h.at[l, :s_hidden, :s_hidden].set(w.T.astype(weight_dtype))
        b_h = b_h.at[l, 0, :s_hidden].set(b.astype(jnp.float32))

    w_out = jnp.zeros((s_p, out_p), weight_dtype).at[:s_hidden, :out_size].set(
        wl.T.astype(weight_dtype))
    b_out = jnp.zeros((1, out_p), jnp.float32).at[0, :out_size].set(
        bl.astype(jnp.float32))

    return dict(w_in=w_in, b_in=b_in, w_h=w_h, b_h=b_h,
                w_out=w_out, b_out=b_out,
                n_hidden=n_hidden, in_size=in_size, out_size=out_size,
                in_p=in_p, s_p=s_p, out_p=out_p)


def model_forward(prepared, x, *, tile_b=512,
                  precision=jax.lax.Precision.DEFAULT):
    """Model.forward.  x: (batch, in_size) -> (batch, out_size)."""
    batch, in_f = x.shape
    in_p, s_p, out_p = prepared["in_p"], prepared["s_p"], prepared["out_p"]
    n_hidden = prepared["n_hidden"]
    out_size = prepared["out_size"]

    # Batch tiling: 512-row tiles amortize the per-step cost / MXU fill-drain
    # for large batches; tiny batches collapse to a single step.
    tile_b = min(tile_b, _round_up(batch, SUBLANE))
    tile_b = _round_up(tile_b, SUBLANE)
    batch_p = _round_up(batch, tile_b)
    n_tiles = batch_p // tile_b

    x_p = jnp.zeros((batch_p, in_p), jnp.float32).at[:batch, :in_f].set(
        x.astype(jnp.float32))

    w_in, b_in = prepared["w_in"], prepared["b_in"]
    w_h, b_h = prepared["w_h"], prepared["b_h"]
    w_out, b_out = prepared["w_out"], prepared["b_out"]
    n_h_alloc = w_h.shape[0]

    nbytes = lambda a: a.size * a.dtype.itemsize
    weight_bytes = (nbytes(w_in) + nbytes(b_in) + nbytes(w_h) + nbytes(b_h)
                    + nbytes(w_out) + nbytes(b_out))
    act_tile_bytes = (tile_b * in_p + tile_b * out_p) * 4
    hidden_tile_bytes = tile_b * s_p * 4
    # resident weights + double-buffered activation tiles + live hidden acts
    vmem_needed = weight_bytes + 2 * act_tile_bytes + 2 * hidden_tile_bytes + (2 << 20)
    vmem_limit = int(min(max(vmem_needed, 32 << 20), 64 << 20))

    flops = 2 * batch_p * (in_p * s_p + n_hidden * s_p * s_p + s_p * out_p)
    bytes_accessed = nbytes(x_p) + weight_bytes + batch_p * out_p * 4
    cost = pl.CostEstimate(flops=flops, transcendentals=0,
                           bytes_accessed=bytes_accessed)

    kernel = _make_fused_mlp_kernel(n_hidden, precision)

    out = pl.pallas_call(
        kernel,
        out_shape=jax.ShapeDtypeStruct((batch_p, out_p), jnp.float32),
        grid=(n_tiles,),
        in_specs=[
            pl.BlockSpec((tile_b, in_p), lambda i: (i, 0)),          # x tile
            pl.BlockSpec((in_p, s_p), lambda i: (0, 0)),             # W_in
            pl.BlockSpec((1, s_p), lambda i: (0, 0)),                # b_in
            pl.BlockSpec((n_h_alloc, s_p, s_p), lambda i: (0, 0, 0)),  # W_hidden
            pl.BlockSpec((n_h_alloc, 1, s_p), lambda i: (0, 0, 0)),    # b_hidden
            pl.BlockSpec((s_p, out_p), lambda i: (0, 0)),            # W_out
            pl.BlockSpec((1, out_p), lambda i: (0, 0)),              # b_out
        ],
        out_specs=pl.BlockSpec((tile_b, out_p), lambda i: (i, 0)),
        compiler_params=pltpu.CompilerParams(
            dimension_semantics=("parallel",),       # v7x: shard batch over 2 TCs
            vmem_limit_bytes=vmem_limit),
        cost_estimate=cost,
    )(x_p, w_in, b_in, w_h, b_h, w_out, b_out)

    # Slice away lane / batch padding in the wrapper.
    return out[:batch, :out_size]


# ----------------------------------------------------------------------------
# Parameter construction (deterministic, mirrors Model.__init__ shapes).
# ----------------------------------------------------------------------------
def kaiming_uniform(key, out_f, in_f, dtype=jnp.float32):
    # Model.__init__ calls kaiming_uniform_(weight) with defaults: a=0, fan_in.
    gain = math.sqrt(2.0)
    bound = gain * math.sqrt(3.0 / in_f)
    return jax.random.uniform(key, (out_f, in_f), dtype, -bound, bound)


def bias_init(key, out_f, in_f, dtype=jnp.float32):
    # torch.nn.Linear default bias init: U(-1/sqrt(fan_in), 1/sqrt(fan_in))
    bound = 1.0 / math.sqrt(in_f)
    return jax.random.uniform(key, (out_f,), dtype, -bound, bound)


def make_model_params(key, in_size, s_hidden, n_hidden, out_size):
    dims = [(in_size, s_hidden)]
    dims += [(s_hidden, s_hidden)] * n_hidden
    dims += [(s_hidden, out_size)]
    params = []
    for fan_in, fan_out in dims:
        key, kw, kb = jax.random.split(key, 3)
        params.append(
            (kaiming_uniform(kw, fan_out, fan_in), bias_init(kb, fan_out, fan_in)))
    return params


def model_forward_ref(params, x, weight_dtype=jnp.bfloat16):
    """Pure-JAX reference matching the kernel numerics (bf16 operands, f32 acc)."""
    h = x.astype(jnp.float32)
    n = len(params)
    for i, (w, b) in enumerate(params):
        h = jnp.dot(h.astype(weight_dtype), w.T.astype(weight_dtype),
                    preferred_element_type=jnp.float32) + b.astype(jnp.float32)
        if i < n - 1:
            h = jnp.maximum(h, 0.0)
    return h


# ----------------------------------------------------------------------------
if __name__ == "__main__":
    # Small shapes consistent with the module's constructor:
    #   out_size (sum of regular param sizes), cond_size, in_size = out+cond+1
    out_size = 6
    cond_size = 3
    in_size = out_size + cond_size + 1   # 10
    s_hidden = 32
    n_hidden = 2
    batch = 40                           # not a tile multiple -> exercises padding
    tile_b = 16                          # small tile -> 3 grid steps (use 512 in prod)

    key = jax.random.PRNGKey(0)
    key, kp, kx = jax.random.split(key, 3)

    params = make_model_params(kp, in_size, s_hidden, n_hidden, out_size)
    x = jax.random.normal(kx, (batch, in_size), dtype=jnp.float32)

    prepared = prepare_kernel_params(params)

    out = model_forward(prepared, x, tile_b=tile_b)
    out = jax.block_until_ready(out)

    ref = model_forward_ref(params, x)
    assert out.shape == (batch, out_size)
    assert jnp.allclose(out, ref, atol=1e-4, rtol=1e-4), "mismatch vs reference"

    print("KERNEL_OK")
</pallas_src>

<mosaic_0001>
module attributes {stable_mosaic.version = 11 : i64} {
  func.func @kernel(%arg0: i32, %arg1: memref<16x128xf32, #tpu.memory_space<vmem>>, %arg2: memref<128x128xbf16, #tpu.memory_space<vmem>>, %arg3: memref<1x128xf32, #tpu.memory_space<vmem>>, %arg4: memref<2x128x128xbf16, #tpu.memory_space<vmem>>, %arg5: memref<2x1x128xf32, #tpu.memory_space<vmem>>, %arg6: memref<128x128xbf16, #tpu.memory_space<vmem>>, %arg7: memref<1x128xf32, #tpu.memory_space<vmem>>, %arg8: memref<16x128xf32, #tpu.memory_space<vmem>>) attributes {dimension_semantics = [#tpu.dimension_semantics<parallel>], iteration_bounds = array<i64: 3>, scalar_prefetch = 0 : i64, scratch_operands = 0 : i64, tpu.core_type = #tpu.core_type<tc>, window_params = [{transform_indices = @transform_0, window_bounds = array<i64: 16, 128>}, {pipeline_mode = #tpu.pipeline_mode<synchronous>, transform_indices = @transform_1, window_bounds = array<i64: 128, 128>}, {pipeline_mode = #tpu.pipeline_mode<synchronous>, transform_indices = @transform_2, window_bounds = array<i64: 1, 128>}, {pipeline_mode = #tpu.pipeline_mode<synchronous>, transform_indices = @transform_3, window_bounds = array<i64: 2, 128, 128>}, {pipeline_mode = #tpu.pipeline_mode<synchronous>, transform_indices = @transform_4, window_bounds = array<i64: 2, 1, 128>}, {pipeline_mode = #tpu.pipeline_mode<synchronous>, transform_indices = @transform_5, window_bounds = array<i64: 128, 128>}, {pipeline_mode = #tpu.pipeline_mode<synchronous>, transform_indices = @transform_6, window_bounds = array<i64: 1, 128>}, {transform_indices = @transform_7, window_bounds = array<i64: 16, 128>}]} {
    %c0 = arith.constant 0 : index
    %c0_0 = arith.constant 0 : index
    %0 = vector.load %arg1[%c0, %c0_0] : memref<16x128xf32, #tpu.memory_space<vmem>>, vector<16x128xf32>
    %1 = arith.truncf %0 : vector<16x128xf32> to vector<16x128xbf16>
    %c0_1 = arith.constant 0 : index
    %c0_2 = arith.constant 0 : index
    %2 = vector.load %arg2[%c0_1, %c0_2] : memref<128x128xbf16, #tpu.memory_space<vmem>>, vector<128x128xbf16>
    %cst = arith.constant dense<0.000000e+00> : vector<16x128xf32>
    %3 = tpu.matmul %1, %2, %cst {dimension_numbers = #tpu.dot_dimension_numbers<[1], [0], [0], [1], [0, 0, 1, 1], [], []>} : vector<16x128xbf16>, vector<128x128xbf16>, vector<16x128xf32> -> vector<16x128xf32>
    %c0_3 = arith.constant 0 : index
    %c0_4 = arith.constant 0 : index
    %4 = vector.load %arg3[%c0_3, %c0_4] : memref<1x128xf32, #tpu.memory_space<vmem>>, vector<1x128xf32>
    %5 = vector.broadcast %4 : vector<1x128xf32> to vector<16x128xf32>
    %6 = arith.addf %3, %5 : vector<16x128xf32>
    %cst_5 = arith.constant 0.000000e+00 : f32
    %7 = vector.broadcast %cst_5 : f32 to vector<16x128xf32>
    %8 = arith.maximumf %6, %7 : vector<16x128xf32>
    %c0_i32 = arith.constant 0 : i32
    %9 = arith.index_cast %c0_i32 : i32 to index
    %c0_6 = arith.constant 0 : index
    %c0_7 = arith.constant 0 : index
    %10 = vector.load %arg4[%9, %c0_6, %c0_7] : memref<2x128x128xbf16, #tpu.memory_space<vmem>>, vector<1x128x128xbf16>
    %11 = vector.shape_cast %10 : vector<1x128x128xbf16> to vector<128x128xbf16>
    %12 = arith.index_cast %c0_i32 : i32 to index
    %c0_8 = arith.constant 0 : index
    %c0_9 = arith.constant 0 : index
    %13 = vector.load %arg5[%12, %c0_8, %c0_9] : memref<2x1x128xf32, #tpu.memory_space<vmem>>, vector<1x1x128xf32>
    %14 = vector.shape_cast %13 : vector<1x1x128xf32> to vector<1x128xf32>
    %15 = arith.truncf %8 : vector<16x128xf32> to vector<16x128xbf16>
    %cst_10 = arith.constant dense<0.000000e+00> : vector<16x128xf32>
    %16 = tpu.matmul %15, %11, %cst_10 {dimension_numbers = #tpu.dot_dimension_numbers<[1], [0], [0], [1], [0, 0, 1, 1], [], []>} : vector<16x128xbf16>, vector<128x128xbf16>, vector<16x128xf32> -> vector<16x128xf32>
    %17 = vector.broadcast %14 : vector<1x128xf32> to vector<16x128xf32>
    %18 = arith.addf %16, %17 : vector<16x128xf32>
    %cst_11 = arith.constant 0.000000e+00 : f32
    %19 = vector.broadcast %cst_11 : f32 to vector<16x128xf32>
    %20 = arith.maximumf %18, %19 : vector<16x128xf32>
    %c1_i32 = arith.constant 1 : i32
    %21 = arith.index_cast %c1_i32 : i32 to index
    %c0_12 = arith.constant 0 : index
    %c0_13 = arith.constant 0 : index
    %22 = vector.load %arg4[%21, %c0_12, %c0_13] : memref<2x128x128xbf16, #tpu.memory_space<vmem>>, vector<1x128x128xbf16>
    %23 = vector.shape_cast %22 : vector<1x128x128xbf16> to vector<128x128xbf16>
    %24 = arith.index_cast %c1_i32 : i32 to index
    %c0_14 = arith.constant 0 : index
    %c0_15 = arith.constant 0 : index
    %25 = vector.load %arg5[%24, %c0_14, %c0_15] : memref<2x1x128xf32, #tpu.memory_space<vmem>>, vector<1x1x128xf32>
    %26 = vector.shape_cast %25 : vector<1x1x128xf32> to vector<1x128xf32>
    %27 = arith.truncf %20 : vector<16x128xf32> to vector<16x128xbf16>
    %cst_16 = arith.constant dense<0.000000e+00> : vector<16x128xf32>
    %28 = tpu.matmul %27, %23, %cst_16 {dimension_numbers = #tpu.dot_dimension_numbers<[1], [0], [0], [1], [0, 0, 1, 1], [], []>} : vector<16x128xbf16>, vector<128x128xbf16>, vector<16x128xf32> -> vector<16x128xf32>
    %29 = vector.broadcast %26 : vector<1x128xf32> to vector<16x128xf32>
    %30 = arith.addf %28, %29 : vector<16x128xf32>
    %cst_17 = arith.constant 0.000000e+00 : f32
    %31 = vector.broadcast %cst_17 : f32 to vector<16x128xf32>
    %32 = arith.maximumf %30, %31 : vector<16x128xf32>
    %c2_i32 = arith.constant 2 : i32
    %33 = arith.truncf %32 : vector<16x128xf32> to vector<16x128xbf16>
    %c0_18 = arith.constant 0 : index
    %c0_19 = arith.constant 0 : index
    %34 = vector.load %arg6[%c0_18, %c0_19] : memref<128x128xbf16, #tpu.memory_space<vmem>>, vector<128x128xbf16>
    %cst_20 = arith.constant dense<0.000000e+00> : vector<16x128xf32>
    %35 = tpu.matmul %33, %34, %cst_20 {dimension_numbers = #tpu.dot_dimension_numbers<[1], [0], [0], [1], [0, 0, 1, 1], [], []>} : vector<16x128xbf16>, vector<128x128xbf16>, vector<16x128xf32> -> vector<16x128xf32>
    %c0_21 = arith.constant 0 : index
    %c0_22 = arith.constant 0 : index
    %36 = vector.load %arg7[%c0_21, %c0_22] : memref<1x128xf32, #tpu.memory_space<vmem>>, vector<1x128xf32>
    %37 = vector.broadcast %36 : vector<1x128xf32> to vector<16x128xf32>
    %38 = arith.addf %35, %37 : vector<16x128xf32>
    %c0_23 = arith.constant 0 : index
    %c0_24 = arith.constant 0 : index
    %39 = vector.load %arg8[%c0_23, %c0_24] : memref<16x128xf32, #tpu.memory_space<vmem>>, vector<16x128xf32>
    tpu.vector_store %arg8[%c0_23, %c0_24], %38 {strides = array<i32>} : memref<16x128xf32, #tpu.memory_space<vmem>>, vector<16x128xf32>,
    return
  }
  func.func @transform_0(%arg0: i32) -> (i32, i32) {
    %c0_i32 = arith.constant 0 : i32
    %c0_i32_0 = arith.constant 0 : i32
    return %arg0, %c0_i32 : i32, i32
  }
  func.func @transform_1(%arg0: i32) -> (i32, i32) {
    %c0_i32 = arith.constant 0 : i32
    %c0_i32_0 = arith.constant 0 : i32
    %c0_i32_1 = arith.constant 0 : i32
    return %c0_i32, %c0_i32_0 : i32, i32
  }
  func.func @transform_2(%arg0: i32) -> (i32, i32) {
    %c0_i32 = arith.constant 0 : i32
    %c0_i32_0 = arith.constant 0 : i32
    %c0_i32_1 = arith.constant 0 : i32
    return %c0_i32, %c0_i32_0 : i32, i32
  }
  func.func @transform_3(%arg0: i32) -> (i32, i32, i32) {
    %c0_i32 = arith.constant 0 : i32
    %c0_i32_0 = arith.constant 0 : i32
    %c0_i32_1 = arith.constant 0 : i32
    %c0_i32_2 = arith.constant 0 : i32
    return %c0_i32, %c0_i32_0, %c0_i32_1 : i32, i32, i32
  }
  func.func @transform_4(%arg0: i32) -> (i32, i32, i32) {
    %c0_i32 = arith.constant 0 : i32
    %c0_i32_0 = arith.constant 0 : i32
    %c0_i32_1 = arith.constant 0 : i32
    %c0_i32_2 = arith.constant 0 : i32
    return %c0_i32, %c0_i32_0, %c0_i32_1 : i32, i32, i32
  }
  func.func @transform_5(%arg0: i32) -> (i32, i32) {
    %c0_i32 = arith.constant 0 : i32
    %c0_i32_0 = arith.constant 0 : i32
    %c0_i32_1 = arith.constant 0 : i32
    return %c0_i32, %c0_i32_0 : i32, i32
  }
  func.func @transform_6(%arg0: i32) -> (i32, i32) {
    %c0_i32 = arith.constant 0 : i32
    %c0_i32_0 = arith.constant 0 : i32
    %c0_i32_1 = arith.constant 0 : i32
    return %c0_i32, %c0_i32_0 : i32, i32
  }
  func.func @transform_7(%arg0: i32) -> (i32, i32) {
    %c0_i32 = arith.constant 0 : i32
    %c0_i32_0 = arith.constant 0 : i32
    return %arg0, %c0_i32 : i32, i32
  }
}

</mosaic_0001>

<bundles_post_ra>
// kernel: tpu_custom_call.1
= control target key start
LH: loop header
LB: loop body
LE: loop exit
PB: predicated region body
PF: predicated region fallthrough
CT: control target
= control target key end

     0   :  { %s1707_s0 = inlined_call_operand.hbm [shape: f32[48,128], index: 0, kind: input, shape index: {}]   ;;  %s1708_s1 = inlined_call_operand.hbm [shape: bf16[128,128], index: 1, kind: input, shape index: {}]   ;;  %s1709_s2 = inlined_call_operand.vmem [shape: f32[1,128], index: 2, kind: input, shape index: {}]   ;;  %s1710_s3 = inlined_call_operand.hbm [shape: bf16[2,128,128], index: 3, kind: input, shape index: {}]   ;;  %s1711_s4 = inlined_call_operand.vmem [shape: f32[2,1,128], index: 4, kind: input, shape index: {}]   ;;  %s1712_s5 = inlined_call_operand.hbm [shape: bf16[128,128], index: 5, kind: input, shape index: {}]   ;;  %s1713_s6 = inlined_call_operand.vmem [shape: f32[1,128], index: 6, kind: input, shape index: {}]   ;;  %s1714_s7 = inlined_call_operand.hbm [shape: f32[48,128], index: 7, kind: output, shape index: {}]  }
   0x1   :  { %1719 = sst [smem:[#allocation15_spill]] %s1708_s1 }
   0x2   :  { %12 = vsyncpa [#allocation3], 0 }
   0x3   :  { %14 = vsyncpa [#allocation3 + $0x1], 0 }
   0x4   :  { %15 = vsyncpa [#allocation6], 0 }
   0x5   :  { %16 = vsyncpa [#allocation9], 0 }
   0x6   :  { %17 = vsyncpa [#allocation4], 0 }
   0x7   :  { %19 = vsyncpa [#allocation4 + $0x1], 0  ;;  %s1449_s24 = smov 0   ;;  %s1451_s25 = smov 0  }
   0x8   :  { %s1453_s26 = smov 0   ;;  %s1455_s27 = smov 0  }
   0x9 LB: > { %s1470_s28 = sadd.s32 4294967295, %s1394_s27   ;;  %s924_s29 = sadd.s32 4294967294, %s1394_s27   ;;  %s1394_s27 = sphi %s1455_s27, %s1739_s27   ;;  %s1390_s26 = sphi %s1453_s26, %s1738_s26   ;;  %s1386_s25 = sphi %s1451_s25, %s1737_s25   ;;  %s1382_s24 = sphi %s1449_s24, %s1736_s24  }
   0xa   : > { %p45_p0 = scmp.ne.s32.totalorder %s1386_s25, %s1382_s24  ;;  %p1715_p1 = scmp.eq.s32.totalorder %s1470_s28, 0 }
   0xb   : > { %p201_p3 = scmp.eq.s32.totalorder %s924_s29, 2  ;;  %p925_p5 = scmp.ge.s32.totalorder %s1394_s27, 1 }
   0xc   : > { %p1479_p4 = por %p1715_p1, %p45_p0  ;;  %p208_p7 = scmp.lt.s32.totalorder %s1394_s27, 4 }
   0xd   : > { %p1484_p6 = por %p201_p3, %p45_p0  ;;  %s1396_s10 = smov [#allocation5]  }
   0xe   : > { %s1720_s30 = scalar_select %p1479_p4, 1, 0 }
   0xf   : > { %s1721_s8 = scalar_select %p1484_p6, 1, 0 }
  0x10   : > { %p1489_p8 = pnand %p925_p5, %p208_p7  ;;  %s220_s11 = sshll.u32 %s1396_s10, 4  ;;  %s221_s11 = int_to_ptr.vmem [resolvable:$true] %s220_s11 }
  0x11   : > { %s1397_s13 = smov [#allocation7]   ;;  %s1398_s15 = smov [#allocation8]  }
  0x12   : > { %s1722_s9 = scalar_select %p1489_p8, 1, 0 }
  0x13   : > { %p1115_p9 = pneg %p1489_p8  ;;  %s236_s14 = sshll.u32 %s1397_s13, 4  ;;  %s237_s14 = int_to_ptr.vmem [resolvable:$true] %s236_s14 }
  0x14   : > { %s252_s16 = sshll.u32 %s1398_s15, 4  ;;  %s1227_s17 = scalar_lea.vmem %s221_s11, 1024  ;;  %s253_s16 = int_to_ptr.vmem [resolvable:$true] %s252_s16 }
  0x15   : > { %p1497_p10 = pnand %p1115_p9, %p1715_p1  ;;  %p1228_p12 = scmp.ne.s32.totalorder %s221_s11, %s1227_s17 }
  0x16   : > { %p1235_p3 = scmp.lt.s32.totalorder %s221_s11, %s221_s11  ;;  %p1236_p5 = scmp.lt.s32.totalorder %s1227_s17, %s1227_s17 }
  0x17   : > { %p1218_p11 = pneg %p1497_p10 }
  0x18   : > { %p1237_p7 = por %p1236_p5, %p1235_p3 }
  0x19   : > { %p1230_p13 = pnand %p1228_p12, %p1218_p11 }
  0x1b   : > { %p1231_p0 = pneg %p1230_p13 }
  0x1d   : > { %p1238_p9 = pnand %p1237_p7, %p1231_p0 }
  0x1f   : > { %1241 = shalt.err (!%p1238_p9)
}
  0x20   : > { %s1399_s18 = smov 64   ;;  %s1400_s19 = smov 4  }
  0x21   : > { %s1724_s1 = sld [smem:[#allocation15_spill]]  ;;  %s1253_s22 = scalar_lea.vmem %s237_s14, 2048 }
  0x22   : > { %p1254_p1 = scmp.ne.s32.totalorder %s237_s14, %s1253_s22  ;;  %p1261_p2 = scmp.lt.s32.totalorder %s237_s14, %s237_s14 }
  0x23   : > { %p1262_p6 = scmp.lt.s32.totalorder %s1253_s22, %s1253_s22 }
  0x24   : > { %p1256_p12 = pnand %p1254_p1, %p1218_p11 }
  0x25   : > { %p1263_p3 = por %p1262_p6, %p1261_p2 }
  0x26   : > { %p1257_p13 = pneg %p1256_p12 }
  0x27   : > { %1118 = dma.hbm_to_vmem [thread:$0]  (!%p1497_p10), %s1724_s1, 1024, %s221_s11, [#allocation6], %s1399_s18, %s1399_s18, %s1400_s19  }
  0x28   : > { %p1264_p0 = pnand %p1263_p3, %p1257_p13 }
  0x2a   : > { %1267 = shalt.err (!%p1264_p0)
}
  0x2b   : > { %1121 = dma.hbm_to_vmem [thread:$0]  (!%p1497_p10), %s1710_s3, 2048, %s237_s14, [#allocation6], %s1399_s18, %s1399_s18, %s1400_s19  }
  0x2c   : > { %s1279_s10 = scalar_lea.vmem %s253_s16, 1024  ;;  %p1287_p9 = scmp.lt.s32.totalorder %s253_s16, %s253_s16 }
  0x2d   : > { %p1280_p5 = scmp.ne.s32.totalorder %s253_s16, %s1279_s10  ;;  %p1288_p12 = scmp.lt.s32.totalorder %s1279_s10, %s1279_s10 }
  0x2f   : > { %p1282_p7 = pnand %p1280_p5, %p1218_p11  ;;  %p1289_p4 = por %p1288_p12, %p1287_p9 }
  0x31   : > { %p1283_p1 = pneg %p1282_p7 }
  0x33   : > { %p1290_p2 = pnand %p1289_p4, %p1283_p1 }
  0x35   : > { %1293 = shalt.err (!%p1290_p2)
}
  0x36   : > { %1124 = dma.hbm_to_vmem [thread:$0]  (!%p1497_p10), %s1712_s5, 1024, %s253_s16, [#allocation9], %s1399_s18, %s1399_s18, %s1400_s19  }
  0x37   : > { %s1528_s14 = sadd.s32 1, %s1394_s27   ;;  %s32_s12 = sadd.s32 1, %s1390_s26 }
  0x38   : > { %s29_s15 = ssub.s32 %s1394_s27, %s1528_s14  ;;  %p39_p6 = scmp.ne.s32.totalorder %s1390_s26, %s1386_s25 }
  0x39   : > { %p30_p4 = scmp.eq.s32.totalorder %s29_s15, 0  ;;  %p40_p11 = scmp.eq.s32.totalorder %s1394_s27, 0 }
  0x3a   : > { %p1136_p13 = scmp.lt.s32.totalorder %s1394_s27, 3  ;;  %p1725_p0 = scmp.eq.s32.totalorder %s1470_s28, 2 }
  0x3b   : > { %s1538_s17 = scalar_select %p30_p4, %s1390_s26, %s32_s12  }
  0x3c   : > { %p41_p3 = por %p40_p11, %p39_p6  ;;  %p1542_p5 = por %p1725_p0, %p39_p6 }
  0x3d   : > { %s269_s21 = sand.u32 1, %s1390_s26   ;;  %s981_s22 = sshll.u32 %s1394_s27, 8 }
  0x3e   : > { %s1726_s20 = scalar_select %p1542_p5, 1, 0 }
  0x3f   : > { %s930_s16 = sshll.u32 %s269_s21, 4  ;;  %s1551_s23 = scalar_lea.hbm %s1707_s0, %s981_s22 }
  0x40   : > { %s273_s29 = scalar_lea.vmem [#allocation2], %s930_s16  ;;  %p1553_p10 = pnand %p1136_p13, %p41_p3 }
  0x41   : > { %s280_s10 = sshll.u32 %s273_s29, 4  ;;  %s1559_s13 = scalar_lea.sflag [#allocation3], %s269_s21  ;;  %s1557_s10 = int_to_ptr.vmem [resolvable:$true] %s280_s10 }
  0x42   : > { %s1294_s15 = scalar_lea.hbm %s1551_s23, 256  ;;  %p1296_p1 = pneg %p1553_p10 }
  0x43   : > { %p1295_p7 = scmp.ne.s32.totalorder %s1551_s23, %s1294_s15  ;;  %s1299_s16 = scalar_lea.hbm %s1707_s0, 768 }
  0x44   : > { %p1300_p2 = scmp.lt.s32.totalorder %s1551_s23, %s1707_s0  ;;  %p1301_p4 = scmp.lt.s32.totalorder %s1299_s16, %s1294_s15 }
  0x45   : > { %p1297_p9 = pnand %p1296_p1, %p1295_p7 }
  0x46   : > { %p1302_p6 = por %p1301_p4, %p1300_p2 }
  0x47   : > { %p1298_p12 = pneg %p1297_p9 }
  0x49   : > { %p1303_p11 = pnand %p1302_p6, %p1298_p12 }
  0x4b   : > { %1306 = shalt.err (!%p1303_p11)
}
  0x4c   : > { %s1307_s21 = scalar_lea.vmem %s1557_s10, 256  ;;  %s1401_s29 = smov [#allocation2]  }
  0x4d   : > { %p1308_p13 = scmp.ne.s32.totalorder %s1557_s10, %s1307_s21  ;;  %s1312_s1 = sshll.u32 %s1401_s29, 4  ;;  %s1313_s1 = int_to_ptr.vmem [resolvable:$false] %s1312_s1 }
  0x4e   : > { %s1314_s12 = scalar_lea.vmem %s1313_s1, 512  ;;  %p1315_p7 = scmp.lt.s32.totalorder %s1557_s10, %s1313_s1 }
  0x4f   : > { %p1310_p3 = pnand %p1308_p13, %p1296_p1  ;;  %p1316_p9 = scmp.lt.s32.totalorder %s1314_s12, %s1307_s21 }
  0x51   : > { %p1311_p0 = pneg %p1310_p3  ;;  %p1317_p5 = por %p1316_p9, %p1315_p7 }
  0x53   : > { %p1318_p8 = pnand %p1317_p5, %p1311_p0 }
  0x55   : > { %1321 = shalt.err (!%p1318_p8)
}
  0x56   : > { %s1402_s15 = smov 128   ;;  %s1403_s22 = smov 8  }
  0x57   : > { %1128 = dma.hbm_to_vmem [thread:$0]  (!%p1553_p10), %s1551_s23, 256, %s1557_s10, %s1559_s13, %s1402_s15, %s1402_s15, %s1403_s22  }
  0x58   : > { %p1728_p1 = scmp.ne.s32.totalorder %s1722_s9, 0 }
  0x59   : > { %s1583_s16 = sand.u32 (!%p1728_p1), 1, %s1386_s25   ;;  %p1729_p8 = scmp.ne.s32.totalorder (!%p1728_p1), %s1720_s30, 0 }
  0x5a   : > { %292 = sbr.rel (%p1728_p1) target bundleno = 958 (0x3be), region = 48  ;;  %s934_s1 = sshll.u32 (!%p1728_p1), %s1583_s16, 4 }
  0x5b   : > { %s295_s18 = scalar_lea.sflag (!%p1728_p1), [#allocation3], %s1583_s16  ;;  %s1589_s19 = scalar_lea.vmem (!%p1728_p1), [#allocation2], %s934_s1 }
  0x5f   : > { %1365 = dma.done.wait (%p1729_p8), %s295_s18, 256  }
  0x60   : > { %1367 = vsyncadd (%p1729_p8), %s295_s18, 4294967040  ;;  %p1730_p5 = scmp.eq.s32.totalorder %s1470_s28, 0 }
  0x62   : > { %1369 = dma.done.wait (%p1730_p5), [#allocation6], 3072   ;;  %p1731_p10 = pmov %p1730_p5 }
  0x63   : > { %p1732_p12 = pmov %p1730_p5 }
  0x64   : > { %1371 = vsyncadd (%p1731_p10), [#allocation6], 4294964224 }
  0x65   : > { %1373 = dma.done.wait (%p1732_p12), [#allocation9], 1024   ;;  %p1733_p2 = pmov %p1730_p5 }
  0x66   : > { %v1404_v0 = vmov 0.0   ;;  %vm1405_vm0 = vmmov 0   ;;  %v1184_v1 = vld [vmem:[#allocation5 + $0x38] sm:$0xff]   ;;  %v1185_v2 = vld [vmem:[#allocation5 + $0x30] sm:$0xff]   ;;  %v1186_v3 = vld [vmem:[#allocation5 + $0x28] sm:$0xff]   ;;  %s340_s12 = scalar_lea.vmem [#allocation10], %s934_s1 }
  0x67   : > { %1375 = vsyncadd (%p1733_p2), [#allocation9], 4294966272  ;;  %1019 = vmatprep.subr.bf16.mxu0 %v1404_v0  ;;  %1035 = vmatprep.mubr.msk.bf16.mxu0 %vm1405_vm0, %v1404_v0  ;;  %v1192_v4 = vld [vmem:[#allocation7 + $0x38] sm:$0xff]   ;;  %v1187_v5 = vld [vmem:[#allocation5 + $0x20] sm:$0xff]   ;;  %s822_s15 = sshll.u32 %s340_s12, 4  ;;  %s982_s22 = sshll.u32 %s1470_s28, 8  ;;  %s1660_s15 = int_to_ptr.vmem [resolvable:$true] %s822_s15 }
  0x68   : > { %1039 = vmatprep.subr.bf16.mxu1 %v1404_v0  ;;  %1055 = vmatprep.mubr.msk.bf16.mxu1 %vm1405_vm0, %v1404_v0  ;;  %v1193_v6 = vld [vmem:[#allocation7 + $0x30] sm:$0xff]   ;;  %v1188_v7 = vld [vmem:[#allocation5 + $0x18] sm:$0xff]   ;;  %v1194_v8 = vld [vmem:[#allocation7 + $0x28] sm:$0xff]   ;;  %s1665_s30 = scalar_lea.hbm %s1714_s7, %s982_s22  ;;  %s809_s1 = scalar_lea.sflag [#allocation4], %s1583_s16 }
  0x69   : > { %1020 = vmatpush3.bf16.msra.mxu0 %v1184_v1  ;;  %1040 = vmatpush3.bf16.msra.mxu1 %v1192_v4  ;;  %v1189_v9 = vld [vmem:[#allocation5 + $0x10] sm:$0xff]   ;;  %v1195_v10 = vld [vmem:[#allocation7 + $0x20] sm:$0xff]   ;;  %v1190_v11 = vld [vmem:[#allocation5 + $0x8] sm:$0xff]   ;;  %s1322_s9 = scalar_lea.vmem %s1660_s15, 256  ;;  %p1734_p6 = scmp.ne.s32.totalorder %s1726_s20, 0 }
  0x6a   : > { %1021 = vmatprep.subr.bf16.mxu0 %v1404_v0  ;;  %1041 = vmatprep.subr.bf16.mxu1 %v1404_v0  ;;  %v1196_v12 = vld [vmem:[#allocation7 + $0x18] sm:$0xff]   ;;  %v1191_v13 = vld [vmem:[#allocation5] sm:$0xff]   ;;  %v1197_v17 = vld [vmem:[#allocation7 + $0x10] sm:$0xff]   ;;  %p1323_p4 = scmp.ne.s32.totalorder %s1660_s15, %s1322_s9  ;;  %s1406_s28 = smov [#allocation10]  }
  0x6b   : > { %v344_v14 = vld [vmem:[%s1589_s19] sm:$0xff]  ;;  %v345_v15 = vld [vmem:[%s1589_s19 + $0x8] sm:$0xff]  ;;  %s1326_s23 = sshll.u32 %s1406_s28, 4  ;;  %s1327_s23 = int_to_ptr.vmem [resolvable:$false] %s1326_s23 }
  0x6c   : > { %v346_v16 = vpack.c.bf16 %v345_v15, %v344_v14  ;;  %v1198_v18 = vld [vmem:[#allocation7 + $0x8] sm:$0xff]   ;;  %v1199_v19 = vld [vmem:[#allocation7] sm:$0xff]   ;;  %v1200_v20 = vld [vmem:[#allocation7 + $0x78] sm:$0xff]   ;;  %p1324_p11 = pnand %p1323_p4, %p1734_p6  ;;  %s1328_s10 = scalar_lea.vmem %s1327_s23, 512 }
  0x6d   : > { %1022 = vmatpush3.bf16.msra.mxu0 %v1185_v2  ;;  %1042 = vmatpush3.bf16.msra.mxu1 %v1193_v6  ;;  %v1201_v21 = vld [vmem:[#allocation7 + $0x70] sm:$0xff]   ;;  %v1202_v22 = vld [vmem:[#allocation7 + $0x68] sm:$0xff]   ;;  %v1203_v23 = vld [vmem:[#allocation7 + $0x60] sm:$0xff]   ;;  %p1329_p3 = scmp.lt.s32.totalorder %s1660_s15, %s1327_s23  ;;  %p1330_p0 = scmp.lt.s32.totalorder %s1328_s10, %s1322_s9 }
  0x6e   : > { %1023 = vmatprep.subr.bf16.mxu0 %v1404_v0  ;;  %1043 = vmatprep.subr.bf16.mxu1 %v1404_v0  ;;  %v1204_v24 = vld [vmem:[#allocation7 + $0x58] sm:$0xff]   ;;  %v939_v25 = vld [vmem:[%s1709_s2] ss:$0 sm:$0xff]  ;;  %v1205_v35 = vld [vmem:[#allocation7 + $0x50] sm:$0xff]   ;;  %p1325_p13 = pneg %p1324_p11 }
  0x6f   : > { %v1206_v36 = vld [vmem:[#allocation7 + $0x48] sm:$0xff]   ;;  %v1207_v37 = vld [vmem:[#allocation7 + $0x40] sm:$0xff]   ;;  %v1208_v38 = vld [vmem:[#allocation8 + $0x38] sm:$0xff]   ;;  %p1331_p7 = por %p1330_p0, %p1329_p3 }
  0x70   : > { %v1209_v39 = vld [vmem:[#allocation8 + $0x30] sm:$0xff]   ;;  %v1210_v40 = vld [vmem:[#allocation8 + $0x28] sm:$0xff]   ;;  %v1211_v41 = vld [vmem:[#allocation8 + $0x20] sm:$0xff]  }
  0x71   : > { %1024 = vmatpush3.bf16.msra.mxu0 %v1186_v3  ;;  %1044 = vmatpush3.bf16.msra.mxu1 %v1194_v8  ;;  %v1212_v42 = vld [vmem:[#allocation8 + $0x18] sm:$0xff]   ;;  %v948_v43 = vld [vmem:[%s1711_s4] ss:$0 sm:$0xff]  ;;  %v1213_v53 = vld [vmem:[#allocation8 + $0x10] sm:$0xff]   ;;  %p1332_p9 = pnand %p1331_p7, %p1325_p13 }
  0x72   : > { %1025 = vmatprep.subr.bf16.mxu0 %v1404_v0  ;;  %1045 = vmatprep.subr.bf16.mxu1 %v1404_v0  ;;  %v1214_v54 = vld [vmem:[#allocation8 + $0x8] sm:$0xff]   ;;  %v1215_v55 = vld [vmem:[#allocation8] sm:$0xff]  }
  0x73   : > { %v958_v56 = vld [vmem:[%s1711_s4 + $0x1] ss:$0 sm:$0xff] }
  0x75   : > { %1026 = vmatpush3.bf16.msra.mxu0 %v1187_v5  ;;  %1046 = vmatpush3.bf16.msra.mxu1 %v1195_v10 }
  0x76   : > { %1027 = vmatprep.subr.bf16.mxu0 %v1404_v0  ;;  %1047 = vmatprep.subr.bf16.mxu1 %v1404_v0 }
  0x79   : > { %1028 = vmatpush3.bf16.msra.mxu0 %v1188_v7  ;;  %1048 = vmatpush3.bf16.msra.mxu1 %v1196_v12 }
  0x7a   : > { %1029 = vmatprep.subr.bf16.mxu0 %v1404_v0  ;;  %1049 = vmatprep.subr.bf16.mxu1 %v1404_v0 }
  0x7d   : > { %1030 = vmatpush3.bf16.msra.mxu0 %v1189_v9  ;;  %1050 = vmatpush3.bf16.msra.mxu1 %v1197_v17 }
  0x7e   : > { %1031 = vmatprep.subr.bf16.mxu0 %v1404_v0  ;;  %1051 = vmatprep.subr.bf16.mxu1 %v1404_v0 }
  0x81   : > { %1032 = vmatpush3.bf16.msra.mxu0 %v1190_v11  ;;  %1052 = vmatpush3.bf16.msra.mxu1 %v1198_v18 }
  0x82   : > { %1033 = vmatprep.subr.bf16.mxu0 %v1404_v0  ;;  %1053 = vmatprep.subr.bf16.mxu1 %v1404_v0 }
  0x85   : > { %1034 = vmatpush3.bf16.msra.mxu0 %v1191_v13  ;;  %1054 = vmatpush3.bf16.msra.mxu1 %v1199_v19 }
  0x86   : > { %1059 = vmatprep.subr.bf16.mxu0 %v1404_v0  ;;  %1079 = vmatprep.subr.bf16.mxu1 %v1404_v0 }
  0x88   : > { %1036 = vmatmul.mubr.bf16.vlgmr.msra.gmra.mxu0 %v346_v16 }
  0x89   : > { %1075 = vmatprep.mubr.msk.bf16.mxu0 %vm1405_vm0, %v1404_v0  ;;  %1060 = vmatpush3.bf16.msra.mxu0 %v1200_v20 }
  0x8a   : > { %1061 = vmatprep.subr.bf16.mxu0 %v1404_v0 }
  0x8d   : > { %1062 = vmatpush3.bf16.msra.mxu0 %v1201_v21 }
  0x8e   : > { %1063 = vmatprep.subr.bf16.mxu0 %v1404_v0 }
  0x91   : > { %1064 = vmatpush3.bf16.msra.mxu0 %v1202_v22 }
  0x92   : > { %1065 = vmatprep.subr.bf16.mxu0 %v1404_v0 }
  0x95   : > { %1066 = vmatpush3.bf16.msra.mxu0 %v1203_v23 }
  0x96   : > { %1067 = vmatprep.subr.bf16.mxu0 %v1404_v0 }
  0x99   : > { %1068 = vmatpush3.bf16.msra.mxu0 %v1204_v24 }
  0x9a   : > { %1069 = vmatprep.subr.bf16.mxu0 %v1404_v0 }
  0x9d   : > { %1070 = vmatpush3.bf16.msra.mxu0 %v1205_v35 }
  0x9e   : > { %1071 = vmatprep.subr.bf16.mxu0 %v1404_v0 }
  0xa1   : > { %1072 = vmatpush3.bf16.msra.mxu0 %v1206_v36 }
  0xa2   : > { %1073 = vmatprep.subr.bf16.mxu0 %v1404_v0 }
  0xa5   : > { %1074 = vmatpush3.bf16.msra.mxu0 %v1207_v37 }
 0x148   : > { %v452_v26 = vpop.f32.mrf.mxu0 }
 0x149   : > { %v453_v28 = vadd.f32 %v939_v25, %v452_v26 }
 0x14a   : > { %v1037_v27 = vpop.f32.mrf.mxu0 }
 0x14b   : > { %v459_v32 = vmax.f32 %v453_v28, 0.0 }
 0x14c   : > { %v455_v29 = vpop.f32.mrf.mxu0 }
 0x14d   : > { %v456_v30 = vadd.f32 %v939_v25, %v455_v29 }
 0x14e   : > { %v1038_v31 = vpop.f32.mrf.mxu0 }
 0x14f   : > { %v460_v33 = vmax.f32 %v456_v30, 0.0 }
 0x151   : > { %v478_v34 = vpack.c.bf16 %v460_v33, %v459_v32 }
 0x153   : > { %1056 = vmatmul.mubr.bf16.vlgmr.msra.gmra.mxu1 %v478_v34 }
 0x154   : > { %1095 = vmatprep.mubr.msk.bf16.mxu1 %vm1405_vm0, %v1404_v0  ;;  %1080 = vmatpush3.bf16.msra.mxu1 %v1208_v38 }
 0x155   : > { %1081 = vmatprep.subr.bf16.mxu1 %v1404_v0 }
 0x158   : > { %1082 = vmatpush3.bf16.msra.mxu1 %v1209_v39 }
 0x159   : > { %1083 = vmatprep.subr.bf16.mxu1 %v1404_v0 }
 0x15c   : > { %1084 = vmatpush3.bf16.msra.mxu1 %v1210_v40 }
 0x15d   : > { %1085 = vmatprep.subr.bf16.mxu1 %v1404_v0 }
 0x160   : > { %1086 = vmatpush3.bf16.msra.mxu1 %v1211_v41 }
 0x161   : > { %1087 = vmatprep.subr.bf16.mxu1 %v1404_v0 }
 0x164   : > { %1088 = vmatpush3.bf16.msra.mxu1 %v1212_v42 }
 0x165   : > { %1089 = vmatprep.subr.bf16.mxu1 %v1404_v0 }
 0x168   : > { %1090 = vmatpush3.bf16.msra.mxu1 %v1213_v53 }
 0x169   : > { %1091 = vmatprep.subr.bf16.mxu1 %v1404_v0 }
 0x16c   : > { %1092 = vmatpush3.bf16.msra.mxu1 %v1214_v54 }
 0x16d   : > { %1093 = vmatprep.subr.bf16.mxu1 %v1404_v0  ;;  %v967_v0 = vld [vmem:[%s1713_s6] ss:$0 sm:$0xff] }
 0x170   : > { %1094 = vmatpush3.bf16.msra.mxu1 %v1215_v55 }
 0x213   : > { %v567_v44 = vpop.f32.mrf.mxu1 }
 0x214   : > { %v568_v46 = vadd.f32 %v948_v43, %v567_v44 }
 0x215   : > { %v1057_v45 = vpop.f32.mrf.mxu1 }
 0x216   : > { %v574_v50 = vmax.f32 %v568_v46, 0.0 }
 0x217   : > { %v570_v47 = vpop.f32.mrf.mxu1 }
 0x218   : > { %v571_v48 = vadd.f32 %v948_v43, %v570_v47 }
 0x219   : > { %v1058_v49 = vpop.f32.mrf.mxu1 }
 0x21a   : > { %v575_v51 = vmax.f32 %v571_v48, 0.0 }
 0x21c   : > { %v595_v52 = vpack.c.bf16 %v575_v51, %v574_v50 }
 0x21e   : > { %1076 = vmatmul.mubr.bf16.vlgmr.msra.gmra.mxu0 %v595_v52 }
 0x2de   : > { %v684_v57 = vpop.f32.mrf.mxu0 }
 0x2df   : > { %v685_v59 = vadd.f32 %v958_v56, %v684_v57 }
 0x2e0   : > { %v1077_v58 = vpop.f32.mrf.mxu0 }
 0x2e1   : > { %v691_v63 = vmax.f32 %v685_v59, 0.0 }
 0x2e2   : > { %v687_v60 = vpop.f32.mrf.mxu0 }
 0x2e3   : > { %v688_v61 = vadd.f32 %v958_v56, %v687_v60 }
 0x2e4   : > { %v1078_v62 = vpop.f32.mrf.mxu0 }
 0x2e5   : > { %v692_v1 = vmax.f32 %v688_v61, 0.0 }
 0x2e7   : > { %v693_v2 = vpack.c.bf16 %v692_v1, %v691_v63 }
 0x2e9   : > { %1096 = vmatmul.mubr.bf16.vlgmr.msra.gmra.mxu1 %v693_v2 }
 0x3a9   : > { %v799_v3 = vpop.f32.mrf.mxu1 }
 0x3aa   : > { %v800_v4 = vadd.f32 %v967_v0, %v799_v3 }
 0x3ab   : > { %v1097_v5 = vpop.f32.mrf.mxu1 }
 0x3ac   : > { %806 = vst [vmem:[%s340_s12] sm:$0xff] %v800_v4 }
 0x3ad   : > { %v802_v6 = vpop.f32.mrf.mxu1 }
 0x3ae   : > { %v803_v7 = vadd.f32 %v967_v0, %v802_v6 }
 0x3af   : > { %v1098_v8 = vpop.f32.mrf.mxu1 }
 0x3b0   : > { %807 = vst [vmem:[%s340_s12 + $0x8] sm:$0xff] %v803_v7 }
 0x3b1   : > { %1335 = shalt.err (!%p1332_p9)
}
 0x3b2   : > { %s1336_s11 = scalar_lea.hbm %s1665_s30, 256  ;;  %s1340_s29 = scalar_lea.hbm %s1714_s7, 768 }
 0x3b3   : > { %p1337_p1 = scmp.ne.s32.totalorder %s1665_s30, %s1336_s11  ;;  %p1341_p10 = scmp.lt.s32.totalorder %s1665_s30, %s1714_s7 }
 0x3b4   : > { %p1342_p12 = scmp.lt.s32.totalorder %s1340_s29, %s1336_s11 }
 0x3b5   : > { %p1338_p8 = pnand %p1337_p1, %p1734_p6 }
 0x3b6   : > { %p1343_p2 = por %p1342_p12, %p1341_p10 }
 0x3b7   : > { %p1339_p5 = pneg %p1338_p8 }
 0x3b9   : > { %p1344_p4 = pnand %p1343_p2, %p1339_p5 }
 0x3bb   : > { %1347 = shalt.err (!%p1344_p4)
}
 0x3bc   : > { %s1407_s18 = smov 128   ;;  %s1408_s19 = smov 8  }
 0x3bd   : > { %1113 = dma.vmem_to_hbm [thread:$0]  (%p1734_p6), %s1660_s15, 256, %s1665_s30, %s809_s1, %s1407_s18, %s1407_s18, %s1408_s19  }
 0x3be PF: > { %p1140_p11 = scmp.ge.s32.totalorder %s1394_s27, 2  ;;  %s837_s9 = sand.u32 1, %s1382_s24  }
 0x3bf   : > { %p1735_p13 = scmp.ne.s32.totalorder %s1721_s8, 0  ;;  %s838_s28 = scalar_lea.sflag [#allocation4], %s837_s9 }
 0x3c1   : > { %p1130_p3 = pnand %p1140_p11, %p1735_p13 }
 0x3c3   : > { %p1131_p0 = pneg %p1130_p3 }
 0x3c5   : > { %1377 = dma.done.wait (%p1131_p0), %s838_s28, 256  }
 0x3c6   : > { %1379 = vsyncadd (%p1131_p0), %s838_s28, 4294967040  ;;  %p22_p7 = scmp.ge.s32.totalorder %s1528_s14, 5   ;;  %s1736_s24 = smov %s1386_s25 }
 0x3c7   : > { %s1737_s25 = smov %s1390_s26  ;;  %s1738_s26 = smov %s1538_s17 }
 0x3c8   : > { %s1739_s27 = smov %s1528_s14  ;;  %24 = sbr.rel (!%p22_p7) target bundleno = 9 (0x9), region = 107 }
 0x3cd   :  { %843 = vsyncpa [#allocation3], 1 }
 0x3ce   :  { %845 = vsyncpa [#allocation3 + $0x1], 1 }
 0x3cf   :  { %846 = vsyncpa [#allocation6], 1 }
 0x3d0   :  { %847 = vsyncpa [#allocation9], 1 }
 0x3d1   :  { %848 = vsyncpa [#allocation4], 1 }
 0x3d2   :  { %850 = vsyncpa [#allocation4 + $0x1], 1 }

</bundles_post_ra>
